<compile_context>
chip_gen: v5e
topology: v5e:2x2
jax: 0.10.0
libtpu: 0.0.40
codegen_flags: <defaults>
</compile_context>

<pallas_src>
import functools

import jax
import jax.numpy as jnp
import numpy as np
from jax import lax
from jax.experimental import pallas as pl
from jax.experimental.pallas import tpu as pltpu


def _layernorm_f32(x, gamma, beta, eps=1e-5):
    # PyTorch nn.LayerNorm: biased variance, eps inside the sqrt.  f32 math.
    mean = jnp.mean(x, axis=-1, keepdims=True)
    var = jnp.mean((x - mean) ** 2, axis=-1, keepdims=True)
    return (x - mean) * lax.rsqrt(var + eps) * gamma + beta


def encoder_layer_kernel(
    x_ref,
    wq_ref, bq_ref, wk_ref, bk_ref, wv_ref, bv_ref, wo_ref, bo_ref,
    w1_ref, b1_ref, w2_ref, b2_ref,
    g1_ref, be1_ref, g2_ref, be2_ref,
    out_ref,
    *, num_heads, depth,
):
    f32 = jnp.float32
    bf16 = jnp.bfloat16
    H = num_heads

    x = x_ref[...]                                   # (S, F) f32
    S, F = x.shape

    # Hoisted once: bf16 view of x replicated across the head axis.  Each head's
    # projection contracts the full F axis, so total MACs equal the fused x @ Wq.
    xb = x.astype(bf16)
    xh = jnp.broadcast_to(xb, (H, S, F))

    # --- batched per-head QKV projections: (H,S,F) @ (H,F,D) -> (H,S,D), f32 acc
    q = jnp.einsum("hsf,hfd->hsd", xh, wq_ref[...],
                   preferred_element_type=f32) + bq_ref[...]
    k = jnp.einsum("hsf,hfd->hsd", xh, wk_ref[...],
                   preferred_element_type=f32) + bk_ref[...]
    v = jnp.einsum("hsf,hfd->hsd", xh, wv_ref[...],
                   preferred_element_type=f32) + bv_ref[...]

    # --- scaled dot-product attention, all heads batched on the MXU
    scale = 1.0 / float(np.sqrt(depth))
    qb = (q * scale).astype(bf16)                    # fold 1/sqrt(dk) into q (f32)
    kb = k.astype(bf16)
    vb = v.astype(bf16)

    s = jnp.einsum("hqd,hkd->hqk", qb, kb, preferred_element_type=f32)   # (H,S,S)
    s = s - jnp.max(s, axis=-1, keepdims=True)
    p = jnp.exp(s)
    p = p * pl.reciprocal(jnp.sum(p, axis=-1, keepdims=True), approx=True)
    o = jnp.einsum("hqk,hkd->hqd", p.astype(bf16), vb,
                   preferred_element_type=f32)                           # (H,S,D)

    # --- output projection: batched (S,D)@(D,F) per head, reduce over heads
    attn_proj = jnp.einsum("hsd,hdf->hsf", o.astype(bf16), wo_ref[...],
                           preferred_element_type=f32)                   # (H,S,F)
    attn_out = jnp.sum(attn_proj, axis=0) + bo_ref[...]                  # (S,F)

    # --- residual + LayerNorm1 (dropout1 identity in eval)
    out1 = _layernorm_f32(x + attn_out, g1_ref[...], be1_ref[...])

    # --- FeedForwardNetwork: Linear -> ReLU -> Linear (bf16 MXU, f32 acc/bias)
    h1 = jnp.dot(out1.astype(bf16), w1_ref[...],
                 preferred_element_type=f32) + b1_ref[...]
    h1 = jnp.maximum(h1, 0.0)
    ffn = jnp.dot(h1.astype(bf16), w2_ref[...],
                  preferred_element_type=f32) + b2_ref[...]

    # --- residual + LayerNorm2 (dropout2 identity in eval)
    out_ref[...] = _layernorm_f32(out1 + ffn, g2_ref[...], be2_ref[...]).astype(out_ref.dtype)


def encoder_layer(x, params, *, num_heads):
    B, S, F = x.shape
    assert F % num_heads == 0
    H = num_heads
    D = F // H
    FF = params["w1"].shape[1]

    bf16 = jnp.bfloat16
    f32 = jnp.float32

    # Pre-arrange weights OUTSIDE the kernel (plain XLA, negligible cost):
    #  * per-head layout so the kernel never slices/reshapes/concats the lane dim
    #  * bf16 weights: 2x less VMEM + HBM traffic, 2-4x MXU throughput
    def heads_in(w):   # (F, H*D) -> (H, F, D)
        return jnp.transpose(w.reshape(F, H, D), (1, 0, 2)).astype(bf16)

    def head_bias(b):  # (1, H*D) -> (H, 1, D), kept f32 (added to f32 accumulator)
        return jnp.transpose(b.reshape(1, H, D), (1, 0, 2)).astype(f32)

    wq3, wk3, wv3 = heads_in(params["wq"]), heads_in(params["wk"]), heads_in(params["wv"])
    bq3, bk3, bv3 = head_bias(params["bq"]), head_bias(params["bk"]), head_bias(params["bv"])
    wo3 = params["wo"].reshape(H, D, F).astype(bf16)          # (H*D, F) -> (H, D, F)

    weight_args = (
        wq3, bq3, wk3, bk3, wv3, bv3, wo3, params["bo"].astype(f32),
        params["w1"].astype(bf16), params["b1"].astype(f32),
        params["w2"].astype(bf16), params["b2"].astype(f32),
        params["g1"].astype(f32), params["be1"].astype(f32),
        params["g2"].astype(f32), params["be2"].astype(f32),
    )

    def invariant_spec(w):
        return pl.BlockSpec(w.shape, lambda b, n=w.ndim: (0,) * n)

    weight_specs = [invariant_spec(w) for w in weight_args]

    # Explicit VMEM budget: double-buffered operands + in-kernel intermediates,
    # with generous headroom, clamped to be safe on v7x (64 MiB physical).
    w_bytes = sum(int(np.prod(w.shape)) * w.dtype.itemsize for w in weight_args)
    inter_bytes = (3 * H * S * D + 2 * H * S * S + H * S * F + 2 * S * FF + 6 * S * F) * 4
    vmem_limit = int(min(48 * 2**20,
                         max(16 * 2**20, 4 * (2 * w_bytes + 4 * S * F * 4 + inter_bytes))))

    kernel = functools.partial(encoder_layer_kernel, num_heads=H, depth=D)

    return pl.pallas_call(
        kernel,
        out_shape=jax.ShapeDtypeStruct((B, S, F), jnp.float32),
        grid_spec=pltpu.PrefetchScalarGridSpec(
            num_scalar_prefetch=0,
            grid=(B,),
            in_specs=[pl.BlockSpec((None, S, F), lambda b: (b, 0, 0))] + weight_specs,
            out_specs=pl.BlockSpec((None, S, F), lambda b: (b, 0, 0)),
        ),
        compiler_params=pltpu.CompilerParams(
            dimension_semantics=("parallel",),      # batch axis shards across v7x TCs
            vmem_limit_bytes=vmem_limit,
        ),
    )(x, *weight_args)


def init_params(key, features, num_heads, fffeatures):
    """Deterministic synthetic parameters. Linear weights are stored already
    transposed to (in, out) so y = x @ W + b."""
    keys = jax.random.split(key, 12)
    s = 0.1

    def lin(k, fan_in, fan_out):
        kw, kb = jax.random.split(k)
        w = jax.random.normal(kw, (fan_in, fan_out), jnp.float32) * s
        b = jax.random.normal(kb, (1, fan_out), jnp.float32) * s
        return w, b

    wq, bq = lin(keys[0], features, features)
    wk, bk = lin(keys[1], features, features)
    wv, bv = lin(keys[2], features, features)
    wo, bo = lin(keys[3], features, features)
    w1, b1 = lin(keys[4], features, fffeatures)
    w2, b2 = lin(keys[5], fffeatures, features)
    g1 = 1.0 + 0.05 * jax.random.normal(keys[6], (1, features), jnp.float32)
    be1 = 0.05 * jax.random.normal(keys[7], (1, features), jnp.float32)
    g2 = 1.0 + 0.05 * jax.random.normal(keys[8], (1, features), jnp.float32)
    be2 = 0.05 * jax.random.normal(keys[9], (1, features), jnp.float32)
    return dict(
        wq=wq, bq=bq, wk=wk, bk=bk, wv=wv, bv=bv, wo=wo, bo=bo,
        w1=w1, b1=b1, w2=w2, b2=b2, g1=g1, be1=be1, g2=g2, be2=be2,
    )


def encoder_layer_ref(x, p, *, num_heads):
    """Pure-JAX f32 reference mirroring the PyTorch forward (eval mode, mask=None)."""
    B, S, F = x.shape
    D = F // num_heads

    def split_heads(t):  # (B,S,F) -> (B,H,S,D)
        return t.reshape(B, S, num_heads, D).transpose(0, 2, 1, 3)

    q = split_heads(x @ p["wq"] + p["bq"])
    k = split_heads(x @ p["wk"] + p["bk"])
    v = split_heads(x @ p["wv"] + p["bv"])
    scores = jnp.einsum("bhqd,bhkd->bhqk", q, k) / np.sqrt(D)
    attn = jax.nn.softmax(scores, axis=-1)
    o = jnp.einsum("bhqk,bhkd->bhqd", attn, v).transpose(0, 2, 1, 3).reshape(B, S, F)
    attn_out = o @ p["wo"] + p["bo"]

    def ln(t, g, b):
        m = jnp.mean(t, axis=-1, keepdims=True)
        var = jnp.mean((t - m) ** 2, axis=-1, keepdims=True)
        return (t - m) / jnp.sqrt(var + 1e-5) * g + b

    out1 = ln(x + attn_out, p["g1"], p["be1"])
    ffn = jnp.maximum(out1 @ p["w1"] + p["b1"], 0.0) @ p["w2"] + p["b2"]
    return ln(out1 + ffn, p["g2"], p["be2"])


if __name__ == "__main__":
    B, S, F, H, FFF = 2, 8, 32, 4, 64

    key = jax.random.PRNGKey(0)
    kx, kp = jax.random.split(key)
    x = jax.random.normal(kx, (B, S, F), jnp.float32)
    params = init_params(kp, F, H, FFF)

    # TODO(synk): dropout is modeled as identity (eval mode); training-mode
    # stochastic dropout would need pltpu.prng_* inside the kernel.
    out = encoder_layer(x, params, num_heads=H)
    out = jax.block_until_ready(out)

    ref = encoder_layer_ref(x, params, num_heads=H)
    # bf16 MXU operands with f32 accumulation: tolerance loosened vs the all-f32
    # version; structural errors would still be O(1) and fail this check.
    np.testing.assert_allclose(np.asarray(out), np.asarray(ref), rtol=3e-2, atol=3e-2)

    print("KERNEL_OK")
</pallas_src>

<mosaic_0001>
module attributes {stable_mosaic.version = 11 : i64} {
  func.func @encoder_layer_kernel(%arg0: i32, %arg1: memref<1x8x32xf32, #tpu.memory_space<vmem>>, %arg2: memref<4x32x8xbf16, #tpu.memory_space<vmem>>, %arg3: memref<4x1x8xf32, #tpu.memory_space<vmem>>, %arg4: memref<4x32x8xbf16, #tpu.memory_space<vmem>>, %arg5: memref<4x1x8xf32, #tpu.memory_space<vmem>>, %arg6: memref<4x32x8xbf16, #tpu.memory_space<vmem>>, %arg7: memref<4x1x8xf32, #tpu.memory_space<vmem>>, %arg8: memref<4x8x32xbf16, #tpu.memory_space<vmem>>, %arg9: memref<1x32xf32, #tpu.memory_space<vmem>>, %arg10: memref<32x64xbf16, #tpu.memory_space<vmem>>, %arg11: memref<1x64xf32, #tpu.memory_space<vmem>>, %arg12: memref<64x32xbf16, #tpu.memory_space<vmem>>, %arg13: memref<1x32xf32, #tpu.memory_space<vmem>>, %arg14: memref<1x32xf32, #tpu.memory_space<vmem>>, %arg15: memref<1x32xf32, #tpu.memory_space<vmem>>, %arg16: memref<1x32xf32, #tpu.memory_space<vmem>>, %arg17: memref<1x32xf32, #tpu.memory_space<vmem>>, %arg18: memref<1x8x32xf32, #tpu.memory_space<vmem>>) attributes {dimension_semantics = [#tpu.dimension_semantics<parallel>], iteration_bounds = array<i64: 2>, scalar_prefetch = 0 : i64, scratch_operands = 0 : i64, tpu.core_type = #tpu.core_type<tc>, window_params = [{transform_indices = @transform_0, window_bounds = array<i64: 1, 8, 32>}, {pipeline_mode = #tpu.pipeline_mode<synchronous>, transform_indices = @transform_1, window_bounds = array<i64: 4, 32, 8>}, {pipeline_mode = #tpu.pipeline_mode<synchronous>, transform_indices = @transform_2, window_bounds = array<i64: 4, 1, 8>}, {pipeline_mode = #tpu.pipeline_mode<synchronous>, transform_indices = @transform_3, window_bounds = array<i64: 4, 32, 8>}, {pipeline_mode = #tpu.pipeline_mode<synchronous>, transform_indices = @transform_4, window_bounds = array<i64: 4, 1, 8>}, {pipeline_mode = #tpu.pipeline_mode<synchronous>, transform_indices = @transform_5, window_bounds = array<i64: 4, 32, 8>}, {pipeline_mode = #tpu.pipeline_mode<synchronous>, transform_indices = @transform_6, window_bounds = array<i64: 4, 1, 8>}, {pipeline_mode = #tpu.pipeline_mode<synchronous>, transform_indices = @transform_7, window_bounds = array<i64: 4, 8, 32>}, {pipeline_mode = #tpu.pipeline_mode<synchronous>, transform_indices = @transform_8, window_bounds = array<i64: 1, 32>}, {pipeline_mode = #tpu.pipeline_mode<synchronous>, transform_indices = @transform_9, window_bounds = array<i64: 32, 64>}, {pipeline_mode = #tpu.pipeline_mode<synchronous>, transform_indices = @transform_10, window_bounds = array<i64: 1, 64>}, {pipeline_mode = #tpu.pipeline_mode<synchronous>, transform_indices = @transform_11, window_bounds = array<i64: 64, 32>}, {pipeline_mode = #tpu.pipeline_mode<synchronous>, transform_indices = @transform_12, window_bounds = array<i64: 1, 32>}, {pipeline_mode = #tpu.pipeline_mode<synchronous>, transform_indices = @transform_13, window_bounds = array<i64: 1, 32>}, {pipeline_mode = #tpu.pipeline_mode<synchronous>, transform_indices = @transform_14, window_bounds = array<i64: 1, 32>}, {pipeline_mode = #tpu.pipeline_mode<synchronous>, transform_indices = @transform_15, window_bounds = array<i64: 1, 32>}, {pipeline_mode = #tpu.pipeline_mode<synchronous>, transform_indices = @transform_16, window_bounds = array<i64: 1, 32>}, {transform_indices = @transform_17, window_bounds = array<i64: 1, 8, 32>}]} {
    %c0 = arith.constant 0 : index
    %c0_0 = arith.constant 0 : index
    %c0_1 = arith.constant 0 : index
    %0 = vector.load %arg1[%c0, %c0_0, %c0_1] : memref<1x8x32xf32, #tpu.memory_space<vmem>>, vector<1x8x32xf32>
    %1 = vector.shape_cast %0 : vector<1x8x32xf32> to vector<8x32xf32>
    %2 = arith.truncf %1 : vector<8x32xf32> to vector<8x32xbf16>
    %3 = vector.shape_cast %2 : vector<8x32xbf16> to vector<1x8x32xbf16>
    %4 = vector.broadcast %3 : vector<1x8x32xbf16> to vector<4x8x32xbf16>
    %c0_2 = arith.constant 0 : index
    %c0_3 = arith.constant 0 : index
    %c0_4 = arith.constant 0 : index
    %5 = vector.load %arg2[%c0_2, %c0_3, %c0_4] : memref<4x32x8xbf16, #tpu.memory_space<vmem>>, vector<4x32x8xbf16>
    "tpu.trace_start"() <{level = 10 : i32, message = "hsf,hfd->hsd"}> : () -> ()
    %cst = arith.constant dense<0.000000e+00> : vector<4x8x8xf32>
    %6 = tpu.matmul %4, %5, %cst {dimension_numbers = #tpu.dot_dimension_numbers<[2], [1], [1], [2], [0, 0, 0, 1, 1, 2], [0], [0]>} : vector<4x8x32xbf16>, vector<4x32x8xbf16>, vector<4x8x8xf32> -> vector<4x8x8xf32>
    "tpu.trace_stop"() : () -> ()
    %c0_5 = arith.constant 0 : index
    %c0_6 = arith.constant 0 : index
    %c0_7 = arith.constant 0 : index
    %7 = vector.load %arg3[%c0_5, %c0_6, %c0_7] : memref<4x1x8xf32, #tpu.memory_space<vmem>>, vector<4x1x8xf32>
    %8 = vector.broadcast %7 : vector<4x1x8xf32> to vector<4x8x8xf32>
    %9 = arith.addf %6, %8 : vector<4x8x8xf32>
    %c0_8 = arith.constant 0 : index
    %c0_9 = arith.constant 0 : index
    %c0_10 = arith.constant 0 : index
    %10 = vector.load %arg4[%c0_8, %c0_9, %c0_10] : memref<4x32x8xbf16, #tpu.memory_space<vmem>>, vector<4x32x8xbf16>
    "tpu.trace_start"() <{level = 10 : i32, message = "hsf,hfd->hsd"}> : () -> ()
    %cst_11 = arith.constant dense<0.000000e+00> : vector<4x8x8xf32>
    %11 = tpu.matmul %4, %10, %cst_11 {dimension_numbers = #tpu.dot_dimension_numbers<[2], [1], [1], [2], [0, 0, 0, 1, 1, 2], [0], [0]>} : vector<4x8x32xbf16>, vector<4x32x8xbf16>, vector<4x8x8xf32> -> vector<4x8x8xf32>
    "tpu.trace_stop"() : () -> ()
    %c0_12 = arith.constant 0 : index
    %c0_13 = arith.constant 0 : index
    %c0_14 = arith.constant 0 : index
    %12 = vector.load %arg5[%c0_12, %c0_13, %c0_14] : memref<4x1x8xf32, #tpu.memory_space<vmem>>, vector<4x1x8xf32>
    %13 = vector.broadcast %12 : vector<4x1x8xf32> to vector<4x8x8xf32>
    %14 = arith.addf %11, %13 : vector<4x8x8xf32>
    %c0_15 = arith.constant 0 : index
    %c0_16 = arith.constant 0 : index
    %c0_17 = arith.constant 0 : index
    %15 = vector.load %arg6[%c0_15, %c0_16, %c0_17] : memref<4x32x8xbf16, #tpu.memory_space<vmem>>, vector<4x32x8xbf16>
    "tpu.trace_start"() <{level = 10 : i32, message = "hsf,hfd->hsd"}> : () -> ()
    %cst_18 = arith.constant dense<0.000000e+00> : vector<4x8x8xf32>
    %16 = tpu.matmul %4, %15, %cst_18 {dimension_numbers = #tpu.dot_dimension_numbers<[2], [1], [1], [2], [0, 0, 0, 1, 1, 2], [0], [0]>} : vector<4x8x32xbf16>, vector<4x32x8xbf16>, vector<4x8x8xf32> -> vector<4x8x8xf32>
    "tpu.trace_stop"() : () -> ()
    %c0_19 = arith.constant 0 : index
    %c0_20 = arith.constant 0 : index
    %c0_21 = arith.constant 0 : index
    %17 = vector.load %arg7[%c0_19, %c0_20, %c0_21] : memref<4x1x8xf32, #tpu.memory_space<vmem>>, vector<4x1x8xf32>
    %18 = vector.broadcast %17 : vector<4x1x8xf32> to vector<4x8x8xf32>
    %19 = arith.addf %16, %18 : vector<4x8x8xf32>
    %cst_22 = arith.constant 0.353553385 : f32
    %20 = vector.broadcast %cst_22 : f32 to vector<4x8x8xf32>
    %21 = arith.mulf %9, %20 : vector<4x8x8xf32>
    %22 = arith.truncf %21 : vector<4x8x8xf32> to vector<4x8x8xbf16>
    %23 = arith.truncf %14 : vector<4x8x8xf32> to vector<4x8x8xbf16>
    %24 = arith.truncf %19 : vector<4x8x8xf32> to vector<4x8x8xbf16>
    "tpu.trace_start"() <{level = 10 : i32, message = "hqd,hkd->hqk"}> : () -> ()
    %cst_23 = arith.constant dense<0.000000e+00> : vector<4x8x8xf32>
    %25 = tpu.matmul %22, %23, %cst_23 {dimension_numbers = #tpu.dot_dimension_numbers<[2], [2], [1], [1], [0, 0, 0, 1, 1, 1], [0], [0]>} : vector<4x8x8xbf16>, vector<4x8x8xbf16>, vector<4x8x8xf32> -> vector<4x8x8xf32>
    "tpu.trace_stop"() : () -> ()
    %cst_24 = arith.constant dense<0xFF800000> : vector<4x8xf32>
    %26 = vector.multi_reduction <maximumf>, %25, %cst_24 [2] : vector<4x8x8xf32> to vector<4x8xf32>
    %27 = vector.shape_cast %26 : vector<4x8xf32> to vector<4x8x1xf32>
    %28 = vector.broadcast %27 : vector<4x8x1xf32> to vector<4x8x8xf32>
    %29 = arith.subf %25, %28 : vector<4x8x8xf32>
    %30 = math.exp %29 : vector<4x8x8xf32>
    %cst_25 = arith.constant dense<0.000000e+00> : vector<4x8xf32>
    %31 = vector.multi_reduction <add>, %30, %cst_25 [2] : vector<4x8x8xf32> to vector<4x8xf32>
    %32 = vector.shape_cast %31 : vector<4x8xf32> to vector<4x8x1xf32>
    %33 = tpu.reciprocal %32 {approx = true} : vector<4x8x1xf32> -> vector<4x8x1xf32>
    %34 = vector.broadcast %33 : vector<4x8x1xf32> to vector<4x8x8xf32>
    %35 = arith.mulf %30, %34 : vector<4x8x8xf32>
    %36 = arith.truncf %35 : vector<4x8x8xf32> to vector<4x8x8xbf16>
    "tpu.trace_start"() <{level = 10 : i32, message = "hqk,hkd->hqd"}> : () -> ()
    %cst_26 = arith.constant dense<0.000000e+00> : vector<4x8x8xf32>
    %37 = tpu.matmul %36, %24, %cst_26 {dimension_numbers = #tpu.dot_dimension_numbers<[2], [1], [1], [2], [0, 0, 0, 1, 1, 2], [0], [0]>} : vector<4x8x8xbf16>, vector<4x8x8xbf16>, vector<4x8x8xf32> -> vector<4x8x8xf32>
    "tpu.trace_stop"() : () -> ()
    %38 = arith.truncf %37 : vector<4x8x8xf32> to vector<4x8x8xbf16>
    %c0_27 = arith.constant 0 : index
    %c0_28 = arith.constant 0 : index
    %c0_29 = arith.constant 0 : index
    %39 = vector.load %arg8[%c0_27, %c0_28, %c0_29] : memref<4x8x32xbf16, #tpu.memory_space<vmem>>, vector<4x8x32xbf16>
    "tpu.trace_start"() <{level = 10 : i32, message = "hsd,hdf->hsf"}> : () -> ()
    %cst_30 = arith.constant dense<0.000000e+00> : vector<4x8x32xf32>
    %40 = tpu.matmul %38, %39, %cst_30 {dimension_numbers = #tpu.dot_dimension_numbers<[2], [1], [1], [2], [0, 0, 0, 1, 1, 2], [0], [0]>} : vector<4x8x8xbf16>, vector<4x8x32xbf16>, vector<4x8x32xf32> -> vector<4x8x32xf32>
    "tpu.trace_stop"() : () -> ()
    %cst_31 = arith.constant dense<0.000000e+00> : vector<8x32xf32>
    %41 = vector.multi_reduction <add>, %40, %cst_31 [0] : vector<4x8x32xf32> to vector<8x32xf32>
    %c0_32 = arith.constant 0 : index
    %c0_33 = arith.constant 0 : index
    %42 = vector.load %arg9[%c0_32, %c0_33] : memref<1x32xf32, #tpu.memory_space<vmem>>, vector<1x32xf32>
    %43 = vector.broadcast %42 : vector<1x32xf32> to vector<8x32xf32>
    %44 = arith.addf %41, %43 : vector<8x32xf32>
    %45 = arith.addf %1, %44 : vector<8x32xf32>
    %c0_34 = arith.constant 0 : index
    %c0_35 = arith.constant 0 : index
    %46 = vector.load %arg14[%c0_34, %c0_35] : memref<1x32xf32, #tpu.memory_space<vmem>>, vector<1x32xf32>
    %c0_36 = arith.constant 0 : index
    %c0_37 = arith.constant 0 : index
    %47 = vector.load %arg15[%c0_36, %c0_37] : memref<1x32xf32, #tpu.memory_space<vmem>>, vector<1x32xf32>
    %cst_38 = arith.constant dense<0.000000e+00> : vector<8xf32>
    %48 = vector.multi_reduction <add>, %45, %cst_38 [1] : vector<8x32xf32> to vector<8xf32>
    %49 = vector.shape_cast %48 : vector<8xf32> to vector<8x1xf32>
    %cst_39 = arith.constant 3.200000e+01 : f32
    %50 = vector.broadcast %cst_39 : f32 to vector<8x1xf32>
    %51 = arith.divf %49, %50 : vector<8x1xf32>
    %52 = vector.broadcast %51 : vector<8x1xf32> to vector<8x32xf32>
    %53 = arith.subf %45, %52 : vector<8x32xf32>
    %54 = arith.mulf %53, %53 : vector<8x32xf32>
    %cst_40 = arith.constant dense<0.000000e+00> : vector<8xf32>
    %55 = vector.multi_reduction <add>, %54, %cst_40 [1] : vector<8x32xf32> to vector<8xf32>
    %56 = vector.shape_cast %55 : vector<8xf32> to vector<8x1xf32>
    %cst_41 = arith.constant 3.200000e+01 : f32
    %57 = vector.broadcast %cst_41 : f32 to vector<8x1xf32>
    %58 = arith.divf %56, %57 : vector<8x1xf32>
    %59 = vector.broadcast %51 : vector<8x1xf32> to vector<8x32xf32>
    %60 = arith.subf %45, %59 : vector<8x32xf32>
    %cst_42 = arith.constant 9.99999974E-6 : f32
    %61 = vector.broadcast %cst_42 : f32 to vector<8x1xf32>
    %62 = arith.addf %58, %61 : vector<8x1xf32>
    %63 = math.rsqrt %62 : vector<8x1xf32>
    %64 = vector.broadcast %63 : vector<8x1xf32> to vector<8x32xf32>
    %65 = arith.mulf %60, %64 : vector<8x32xf32>
    %66 = vector.broadcast %46 : vector<1x32xf32> to vector<8x32xf32>
    %67 = arith.mulf %65, %66 : vector<8x32xf32>
    %68 = vector.broadcast %47 : vector<1x32xf32> to vector<8x32xf32>
    %69 = arith.addf %67, %68 : vector<8x32xf32>
    %70 = arith.truncf %69 : vector<8x32xf32> to vector<8x32xbf16>
    %c0_43 = arith.constant 0 : index
    %c0_44 = arith.constant 0 : index
    %71 = vector.load %arg10[%c0_43, %c0_44] : memref<32x64xbf16, #tpu.memory_space<vmem>>, vector<32x64xbf16>
    %cst_45 = arith.constant dense<0.000000e+00> : vector<8x64xf32>
    %72 = tpu.matmul %70, %71, %cst_45 {dimension_numbers = #tpu.dot_dimension_numbers<[1], [0], [0], [1], [0, 0, 1, 1], [], []>} : vector<8x32xbf16>, vector<32x64xbf16>, vector<8x64xf32> -> vector<8x64xf32>
    %c0_46 = arith.constant 0 : index
    %c0_47 = arith.constant 0 : index
    %73 = vector.load %arg11[%c0_46, %c0_47] : memref<1x64xf32, #tpu.memory_space<vmem>>, vector<1x64xf32>
    %74 = vector.broadcast %73 : vector<1x64xf32> to vector<8x64xf32>
    %75 = arith.addf %72, %74 : vector<8x64xf32>
    %cst_48 = arith.constant 0.000000e+00 : f32
    %76 = vector.broadcast %cst_48 : f32 to vector<8x64xf32>
    %77 = arith.maximumf %75, %76 : vector<8x64xf32>
    %78 = arith.truncf %77 : vector<8x64xf32> to vector<8x64xbf16>
    %c0_49 = arith.constant 0 : index
    %c0_50 = arith.constant 0 : index
    %79 = vector.load %arg12[%c0_49, %c0_50] : memref<64x32xbf16, #tpu.memory_space<vmem>>, vector<64x32xbf16>
    %cst_51 = arith.constant dense<0.000000e+00> : vector<8x32xf32>
    %80 = tpu.matmul %78, %79, %cst_51 {dimension_numbers = #tpu.dot_dimension_numbers<[1], [0], [0], [1], [0, 0, 1, 1], [], []>} : vector<8x64xbf16>, vector<64x32xbf16>, vector<8x32xf32> -> vector<8x32xf32>
    %c0_52 = arith.constant 0 : index
    %c0_53 = arith.constant 0 : index
    %81 = vector.load %arg13[%c0_52, %c0_53] : memref<1x32xf32, #tpu.memory_space<vmem>>, vector<1x32xf32>
    %82 = vector.broadcast %81 : vector<1x32xf32> to vector<8x32xf32>
    %83 = arith.addf %80, %82 : vector<8x32xf32>
    %84 = arith.addf %69, %83 : vector<8x32xf32>
    %c0_54 = arith.constant 0 : index
    %c0_55 = arith.constant 0 : index
    %85 = vector.load %arg16[%c0_54, %c0_55] : memref<1x32xf32, #tpu.memory_space<vmem>>, vector<1x32xf32>
    %c0_56 = arith.constant 0 : index
    %c0_57 = arith.constant 0 : index
    %86 = vector.load %arg17[%c0_56, %c0_57] : memref<1x32xf32, #tpu.memory_space<vmem>>, vector<1x32xf32>
    %cst_58 = arith.constant dense<0.000000e+00> : vector<8xf32>
    %87 = vector.multi_reduction <add>, %84, %cst_58 [1] : vector<8x32xf32> to vector<8xf32>
    %88 = vector.shape_cast %87 : vector<8xf32> to vector<8x1xf32>
    %cst_59 = arith.constant 3.200000e+01 : f32
    %89 = vector.broadcast %cst_59 : f32 to vector<8x1xf32>
    %90 = arith.divf %88, %89 : vector<8x1xf32>
    %91 = vector.broadcast %90 : vector<8x1xf32> to vector<8x32xf32>
    %92 = arith.subf %84, %91 : vector<8x32xf32>
    %93 = arith.mulf %92, %92 : vector<8x32xf32>
    %cst_60 = arith.constant dense<0.000000e+00> : vector<8xf32>
    %94 = vector.multi_reduction <add>, %93, %cst_60 [1] : vector<8x32xf32> to vector<8xf32>
    %95 = vector.shape_cast %94 : vector<8xf32> to vector<8x1xf32>
    %cst_61 = arith.constant 3.200000e+01 : f32
    %96 = vector.broadcast %cst_61 : f32 to vector<8x1xf32>
    %97 = arith.divf %95, %96 : vector<8x1xf32>
    %98 = vector.broadcast %90 : vector<8x1xf32> to vector<8x32xf32>
    %99 = arith.subf %84, %98 : vector<8x32xf32>
    %cst_62 = arith.constant 9.99999974E-6 : f32
    %100 = vector.broadcast %cst_62 : f32 to vector<8x1xf32>
    %101 = arith.addf %97, %100 : vector<8x1xf32>
    %102 = math.rsqrt %101 : vector<8x1xf32>
    %103 = vector.broadcast %102 : vector<8x1xf32> to vector<8x32xf32>
    %104 = arith.mulf %99, %103 : vector<8x32xf32>
    %105 = vector.broadcast %85 : vector<1x32xf32> to vector<8x32xf32>
    %106 = arith.mulf %104, %105 : vector<8x32xf32>
    %107 = vector.broadcast %86 : vector<1x32xf32> to vector<8x32xf32>
    %108 = arith.addf %106, %107 : vector<8x32xf32>
    %c0_63 = arith.constant 0 : index
    %c0_64 = arith.constant 0 : index
    %c0_65 = arith.constant 0 : index
    %109 = vector.load %arg18[%c0_63, %c0_64, %c0_65] : memref<1x8x32xf32, #tpu.memory_space<vmem>>, vector<1x8x32xf32>
    %110 = vector.shape_cast %109 : vector<1x8x32xf32> to vector<8x32xf32>
    %111 = vector.shape_cast %108 : vector<8x32xf32> to vector<1x8x32xf32>
    tpu.vector_store %arg18[%c0_63, %c0_64, %c0_65], %111 {strides = array<i32>} : memref<1x8x32xf32, #tpu.memory_space<vmem>>, vector<1x8x32xf32>,
    return
  }
  func.func @transform_0(%arg0: i32) -> (i32, i32, i32) {
    %c0_i32 = arith.constant 0 : i32
    %c0_i32_0 = arith.constant 0 : i32
    %c0_i32_1 = arith.constant 0 : i32
    return %arg0, %c0_i32, %c0_i32_0 : i32, i32, i32
  }
  func.func @transform_1(%arg0: i32) -> (i32, i32, i32) {
    %c0_i32 = arith.constant 0 : i32
    %c0_i32_0 = arith.constant 0 : i32
    %c0_i32_1 = arith.constant 0 : i32
    %c0_i32_2 = arith.constant 0 : i32
    return %c0_i32, %c0_i32_0, %c0_i32_1 : i32, i32, i32
  }
  func.func @transform_2(%arg0: i32) -> (i32, i32, i32) {
    %c0_i32 = arith.constant 0 : i32
    %c0_i32_0 = arith.constant 0 : i32
    %c0_i32_1 = arith.constant 0 : i32
    %c0_i32_2 = arith.constant 0 : i32
    return %c0_i32, %c0_i32_0, %c0_i32_1 : i32, i32, i32
  }
  func.func @transform_3(%arg0: i32) -> (i32, i32, i32) {
    %c0_i32 = arith.constant 0 : i32
    %c0_i32_0 = arith.constant 0 : i32
    %c0_i32_1 = arith.constant 0 : i32
    %c0_i32_2 = arith.constant 0 : i32
    return %c0_i32, %c0_i32_0, %c0_i32_1 : i32, i32, i32
  }
  func.func @transform_4(%arg0: i32) -> (i32, i32, i32) {
    %c0_i32 = arith.constant 0 : i32
    %c0_i32_0 = arith.constant 0 : i32
    %c0_i32_1 = arith.constant 0 : i32
    %c0_i32_2 = arith.constant 0 : i32
    return %c0_i32, %c0_i32_0, %c0_i32_1 : i32, i32, i32
  }
  func.func @transform_5(%arg0: i32) -> (i32, i32, i32) {
    %c0_i32 = arith.constant 0 : i32
    %c0_i32_0 = arith.constant 0 : i32
    %c0_i32_1 = arith.constant 0 : i32
    %c0_i32_2 = arith.constant 0 : i32
    return %c0_i32, %c0_i32_0, %c0_i32_1 : i32, i32, i32
  }
  func.func @transform_6(%arg0: i32) -> (i32, i32, i32) {
    %c0_i32 = arith.constant 0 : i32
    %c0_i32_0 = arith.constant 0 : i32
    %c0_i32_1 = arith.constant 0 : i32
    %c0_i32_2 = arith.constant 0 : i32
    return %c0_i32, %c0_i32_0, %c0_i32_1 : i32, i32, i32
  }
  func.func @transform_7(%arg0: i32) -> (i32, i32, i32) {
    %c0_i32 = arith.constant 0 : i32
    %c0_i32_0 = arith.constant 0 : i32
    %c0_i32_1 = arith.constant 0 : i32
    %c0_i32_2 = arith.constant 0 : i32
    return %c0_i32, %c0_i32_0, %c0_i32_1 : i32, i32, i32
  }
  func.func @transform_8(%arg0: i32) -> (i32, i32) {
    %c0_i32 = arith.constant 0 : i32
    %c0_i32_0 = arith.constant 0 : i32
    %c0_i32_1 = arith.constant 0 : i32
    return %c0_i32, %c0_i32_0 : i32, i32
  }
  func.func @transform_9(%arg0: i32) -> (i32, i32) {
    %c0_i32 = arith.constant 0 : i32
    %c0_i32_0 = arith.constant 0 : i32
    %c0_i32_1 = arith.constant 0 : i32
    return %c0_i32, %c0_i32_0 : i32, i32
  }
  func.func @transform_10(%arg0: i32) -> (i32, i32) {
    %c0_i32 = arith.constant 0 : i32
    %c0_i32_0 = arith.constant 0 : i32
    %c0_i32_1 = arith.constant 0 : i32
    return %c0_i32, %c0_i32_0 : i32, i32
  }
  func.func @transform_11(%arg0: i32) -> (i32, i32) {
    %c0_i32 = arith.constant 0 : i32
    %c0_i32_0 = arith.constant 0 : i32
    %c0_i32_1 = arith.constant 0 : i32
    return %c0_i32, %c0_i32_0 : i32, i32
  }
  func.func @transform_12(%arg0: i32) -> (i32, i32) {
    %c0_i32 = arith.constant 0 : i32
    %c0_i32_0 = arith.constant 0 : i32
    %c0_i32_1 = arith.constant 0 : i32
    return %c0_i32, %c0_i32_0 : i32, i32
  }
  func.func @transform_13(%arg0: i32) -> (i32, i32) {
    %c0_i32 = arith.constant 0 : i32
    %c0_i32_0 = arith.constant 0 : i32
    %c0_i32_1 = arith.constant 0 : i32
    return %c0_i32, %c0_i32_0 : i32, i32
  }
  func.func @transform_14(%arg0: i32) -> (i32, i32) {
    %c0_i32 = arith.constant 0 : i32
    %c0_i32_0 = arith.constant 0 : i32
    %c0_i32_1 = arith.constant 0 : i32
    return %c0_i32, %c0_i32_0 : i32, i32
  }
  func.func @transform_15(%arg0: i32) -> (i32, i32) {
    %c0_i32 = arith.constant 0 : i32
    %c0_i32_0 = arith.constant 0 : i32
    %c0_i32_1 = arith.constant 0 : i32
    return %c0_i32, %c0_i32_0 : i32, i32
  }
  func.func @transform_16(%arg0: i32) -> (i32, i32) {
    %c0_i32 = arith.constant 0 : i32
    %c0_i32_0 = arith.constant 0 : i32
    %c0_i32_1 = arith.constant 0 : i32
    return %c0_i32, %c0_i32_0 : i32, i32
  }
  func.func @transform_17(%arg0: i32) -> (i32, i32, i32) {
    %c0_i32 = arith.constant 0 : i32
    %c0_i32_0 = arith.constant 0 : i32
    %c0_i32_1 = arith.constant 0 : i32
    return %arg0, %c0_i32, %c0_i32_0 : i32, i32, i32
  }
}

</mosaic_0001>

<bundles_post_ra>
// kernel: tpu_custom_call.1
= control target key start
LH: loop header
LB: loop body
LE: loop exit
PB: predicated region body
PF: predicated region fallthrough
CT: control target
= control target key end

     0   :  { %s2227_s0 = inlined_call_operand.vmem [shape: f32[2,8,32], index: 0, kind: input, shape index: {}]   ;;  %s2228_s1 = inlined_call_operand.vmem [shape: bf16[4,32,8], index: 1, kind: input, shape index: {}]   ;;  %s2229_s2 = inlined_call_operand.vmem [shape: f32[4,1,8], index: 2, kind: input, shape index: {}]   ;;  %s2230_s3 = inlined_call_operand.vmem [shape: bf16[4,32,8], index: 3, kind: input, shape index: {}]   ;;  %s2231_s4 = inlined_call_operand.vmem [shape: f32[4,1,8], index: 4, kind: input, shape index: {}]   ;;  %s2232_s5 = inlined_call_operand.vmem [shape: bf16[4,32,8], index: 5, kind: input, shape index: {}]   ;;  %s2233_s6 = inlined_call_operand.vmem [shape: f32[4,1,8], index: 6, kind: input, shape index: {}]   ;;  %s2234_s7 = inlined_call_operand.vmem [shape: bf16[4,8,32], index: 7, kind: input, shape index: {}]   ;;  %s2235_s8 = inlined_call_operand.vmem [shape: f32[1,32], index: 8, kind: input, shape index: {}]   ;;  %s2236_s9 = inlined_call_operand.vmem [shape: bf16[32,64], index: 9, kind: input, shape index: {}]   ;;  %s2237_s10 = inlined_call_operand.vmem [shape: f32[1,64], index: 10, kind: input, shape index: {}]   ;;  %s2238_s11 = inlined_call_operand.vmem [shape: bf16[64,32], index: 11, kind: input, shape index: {}]   ;;  %s2239_s12 = inlined_call_operand.vmem [shape: f32[1,32], index: 12, kind: input, shape index: {}]   ;;  %s2240_s13 = inlined_call_operand.vmem [shape: f32[1,32], index: 13, kind: input, shape index: {}]   ;;  %s2241_s14 = inlined_call_operand.vmem [shape: f32[1,32], index: 14, kind: input, shape index: {}]   ;;  %s2242_s15 = inlined_call_operand.vmem [shape: f32[1,32], index: 15, kind: input, shape index: {}]   ;;  %s2243_s16 = inlined_call_operand.vmem [shape: f32[1,32], index: 16, kind: input, shape index: {}]   ;;  %s2244_s17 = inlined_call_operand.hbm [shape: f32[2,8,32], index: 17, kind: output, shape index: {}]  }
   0x1   :  { %2255 = sst [smem:[#allocation12_spill]] %s2227_s0 }
   0x2   :  { %2256 = sst [smem:[#allocation13_spill]] %s2228_s1 }
   0x3   :  { %2257 = sst [smem:[#allocation14_spill]] %s2229_s2 }
   0x4   :  { %2258 = sst [smem:[#allocation15_spill]] %s2242_s15 }
   0x5   :  { %2259 = sst [smem:[#allocation16_spill]] %s2243_s16 }
   0x6   :  { %2260 = sst [smem:[#allocation17_spill]] %s2244_s17 }
   0x7   :  { %22 = vsyncpa [#allocation3], 0 }
   0x8   :  { %24 = vsyncpa [#allocation3 + $0x1], 0  ;;  %s1924_s24 = smov 0   ;;  %s1926_s25 = smov 0  }
   0x9   :  { %s1928_s26 = smov 0   ;;  %s1930_s27 = smov 0  }
   0xa LB: > { %2261 = sst [smem:[#allocation5_spill]] %s1819_s24  ;;  %s1945_s28 = sadd.s32 4294967295, %s1831_s27   ;;  %s1831_s27 = sphi %s1930_s27, %s2280_s27   ;;  %s1827_s26 = sphi %s1928_s26, %s2282_s26   ;;  %s1823_s25 = sphi %s1926_s25, %s2284_s25   ;;  %s1819_s24 = sphi %s1924_s24, %s2283_s24  }
   0xb   : > { %2262 = sst [smem:[#allocation6_spill]] %s1827_s26  ;;  %s1502_s29 = sadd.s32 4294967294, %s1831_s27  }
   0xc   : > { %2263 = sst [smem:[#allocation7_spill]] %s1831_s27  ;;  %s1949_s0 = sadd.s32 1, %s1831_s27  }
   0xd   : > { %2264 = sst [smem:[#allocation8_spill]] %s1949_s0  ;;  %s399_s30 = sadd.s32 1, %s1827_s26 }
   0xe   : > { %s396_s18 = ssub.s32 %s1831_s27, %s1949_s0  ;;  %p409_p0 = scmp.ne.s32.totalorder %s1827_s26, %s1823_s25 }
   0xf   : > { %p397_p1 = scmp.eq.s32.totalorder %s396_s18, 0  ;;  %p410_p2 = scmp.eq.s32.totalorder %s1945_s28, 1 }
  0x10   : > { %p415_p3 = scmp.ne.s32.totalorder %s1823_s25, %s1819_s24  ;;  %p416_p4 = scmp.eq.s32.totalorder %s1502_s29, 1 }
  0x11   : > { %s1960_s19 = scalar_select %p397_p1, %s1827_s26, %s399_s30  }
  0x12   : > { %p1962_p5 = por %p410_p2, %p409_p0  ;;  %p1966_p6 = por %p416_p4, %p415_p3 }
  0x13   : > { %2265 = sst [smem:[#allocation9_spill]] %s1960_s19  ;;  %p1505_p7 = scmp.ge.s32.totalorder %s1831_s27, 1 }
  0x14   : > { %s2266_s1 = scalar_select %p1962_p5, 1, 0 }
  0x15   : > { %s2268_s20 = scalar_select %p1966_p6, 1, 0 }
  0x16   : > { %2267 = sst [smem:[#allocation10_spill]] %s2266_s1  ;;  %p489_p8 = scmp.lt.s32.totalorder %s1831_s27, 3 }
  0x17   : > { %2269 = sst [smem:[#allocation11_spill]] %s2268_s20 }
  0x18   : > { %p490_p9 = pnand %p1505_p7, %p489_p8 }
  0x19   : > { %s2270_s23 = sld [smem:[#allocation13_spill]] (!%p490_p9)  ;;  %p540_p10 = scmp.lt.s32.totalorder (!%p490_p9), %s1945_s28, 1 }
  0x1a   : > { %493 = sbr.rel (%p490_p9) target bundleno = 1673 (0x689), region = 88  ;;  %s2271_s1 = sld [smem:[#allocation12_spill]] (!%p490_p9) }
  0x1b   : > { %s2272_s2 = sld [smem:[#allocation14_spill]] (!%p490_p9)  ;;  %s537_s26 = sand.u32 (!%p490_p9), 1, %s1823_s25  }
  0x1c   : > { %s1506_s15 = sshll.u32 (!%p490_p9), %s537_s26, 3  ;;  %s2273_s20 = sld [smem:[#allocation15_spill]] (!%p490_p9) }
  0x1d   : > { %s2274_s22 = sld [smem:[#allocation17_spill]] (!%p490_p9) }
  0x1e   : > { %s2276_s27 = sld [smem:[#allocation16_spill]] (!%p490_p9) }
  0x1f   : > { %v1659_v0 = vld [vmem:[%s2270_s23 + $0x8] sm:$0xff]  ;;  %v1661_v1 = vld [vmem:[%s2270_s23 + $0x18] sm:$0xff]  ;;  %v1658_v4 = vld [vmem:[%s2270_s23] sm:$0xff]  ;;  %s541_s29 = scalar_select %p540_p10, %s1945_s28, 1  ;;  %vm591_vm0 = vcmask 261120   ;;  %vm963_vm1 = vcmask 64512  }
  0x20   : > { %v1663_v2 = vld [vmem:[%s2270_s23 + $0x28] sm:$0xff]  ;;  %v1665_v3 = vld [vmem:[%s2270_s23 + $0x38] sm:$0xff]  ;;  %601 = vmatpush.bf16.msra.mxu0 %v1659_v0  ;;  %626 = vmatpush.bf16.msra.mxu1 %v1661_v1  ;;  %v1660_v5 = vld [vmem:[%s2270_s23 + $0x10] sm:$0xff]  ;;  %vm1091_vm2 = vcmask 1043456   ;;  %vm1376_vm7 = vcmask 523264  }
  0x21   : > { %651 = vmatpush.bf16.msra.mxu2 %v1663_v2  ;;  %676 = vmatpush.bf16.msra.mxu3 %v1665_v3  ;;  %v1662_v6 = vld [vmem:[%s2270_s23 + $0x20] sm:$0xff]  ;;  %v1664_v7 = vld [vmem:[%s2270_s23 + $0x30] sm:$0xff]  ;;  %s1507_s0 = sshll.u32 %s541_s29, 3  ;;  %v1667_v8 = vld [vmem:[%s2230_s3 + $0x8] sm:$0xff]  ;;  %s539_s29 = scalar_lea.vmem [#allocation2], %s1506_s15 }
  0x22   : > { %v1669_v9 = vld [vmem:[%s2230_s3 + $0x18] sm:$0xff]  ;;  %s543_s17 = scalar_lea.vmem %s2271_s1, %s1507_s0  ;;  %v1671_v10 = vld [vmem:[%s2230_s3 + $0x28] sm:$0xff]  ;;  %v1666_v13 = vld [vmem:[%s2230_s3] sm:$0xff]  ;;  %s1428_s1 = scalar_lea.sflag [#allocation3], %s537_s26 }
  0x23   : > { %v1673_v11 = vld [vmem:[%s2230_s3 + $0x38] sm:$0xff]  ;;  %v2013_v12 = vld [vmem:[%s543_s17] sm:$0xff]  ;;  %v1668_v14 = vld [vmem:[%s2230_s3 + $0x10] sm:$0xff]  ;;  %s1655_s17 = sshll.u32 %s1945_s28, 3  ;;  %s1440_s28 = sshll.u32 %s539_s29, 4  ;;  %s1441_s28 = int_to_ptr.vmem [resolvable:$true] %s1440_s28 }
  0x24   : > { %602 = vmatpush.bf16.msra.mxu0 %v1658_v4  ;;  %627 = vmatpush.bf16.msra.mxu1 %v1660_v5  ;;  %v546_v15 = vpack.c.bf16 %v2013_v12, %v2013_v12  ;;  %v1670_v16 = vld [vmem:[%s2230_s3 + $0x20] sm:$0xff]  ;;  %v1672_v17 = vld [vmem:[%s2230_s3 + $0x30] sm:$0xff]  ;;  %v1679_v18 = vld [vmem:[%s2232_s5 + $0x28] sm:$0xff]  ;;  %s1438_s19 = scalar_lea.hbm %s2274_s22, %s1655_s17  ;;  %s1789_s15 = scalar_lea.hbm %s2274_s22, 16 }
  0x25   : > { %652 = vmatpush.bf16.msra.mxu2 %v1662_v6  ;;  %677 = vmatpush.bf16.msra.mxu3 %v1664_v7  ;;  %v1675_v19 = vld [vmem:[%s2232_s5 + $0x8] sm:$0xff]  ;;  %v1677_v20 = vld [vmem:[%s2232_s5 + $0x18] sm:$0xff]  ;;  %v1678_v21 = vld [vmem:[%s2232_s5 + $0x20] sm:$0xff] }
  0x26   : > { %v1674_v22 = vld [vmem:[%s2232_s5] sm:$0xff]  ;;  %v1676_v23 = vld [vmem:[%s2232_s5 + $0x10] sm:$0xff]  ;;  %v1681_v24 = vld [vmem:[%s2232_s5 + $0x38] sm:$0xff] }
  0x27   : > { %1516 = vmatmul.msk.bf16.vlgmr.msra.gmra.mxu0 %vm591_vm0, %v546_v15  ;;  %1525 = vmatmul.msk.bf16.vlgmr.msra.gmra.mxu1 %vm591_vm0, %v546_v15  ;;  %v1680_v25 = vld [vmem:[%s2232_s5 + $0x30] sm:$0xff]  ;;  %v1729_v32 = vld [vmem:[%s2272_s2 + $0x1] ss:$0 sm:$0xff]  ;;  %v1732_v33 = vld [vmem:[%s2231_s4] ss:$0 sm:$0xff] }
  0x28   : > { %733 = vmatpush.bf16.msrb.mxu0 %v1667_v8  ;;  %758 = vmatpush.bf16.msrb.mxu1 %v1669_v9  ;;  %v1733_v34 = vld [vmem:[%s2231_s4 + $0x1] ss:$0 sm:$0xff]  ;;  %v1728_v37 = vld [vmem:[%s2272_s2] ss:$0 sm:$0xff]  ;;  %v1734_v46 = vld [vmem:[%s2231_s4 + $0x2] ss:$0 sm:$0xff] }
  0x29   : > { %1534 = vmatmul.msk.bf16.vlgmr.msra.gmra.mxu2 %vm591_vm0, %v546_v15  ;;  %1543 = vmatmul.msk.bf16.vlgmr.msra.gmra.mxu3 %vm591_vm0, %v546_v15  ;;  %v1735_v47 = vld [vmem:[%s2231_s4 + $0x3] ss:$0 sm:$0xff]  ;;  %v1730_v51 = vld [vmem:[%s2272_s2 + $0x2] ss:$0 sm:$0xff] }
  0x2a   : > { %783 = vmatpush.bf16.msrb.mxu2 %v1671_v10  ;;  %808 = vmatpush.bf16.msrb.mxu3 %v1673_v11  ;;  %v1731_v52 = vld [vmem:[%s2272_s2 + $0x3] ss:$0 sm:$0xff]  ;;  %v1736_v10 = vld [vmem:[%s2233_s6] ss:$0 sm:$0xff]  ;;  %v1737_v11 = vld [vmem:[%s2233_s6 + $0x1] ss:$0 sm:$0xff] }
  0x2b   : > { %s1442_s2 = sshll.u32 %s1438_s19, 4  ;;  %s1443_s2 = int_to_ptr.hbm [resolvable:$true] %s1442_s2 }
  0x2c   : > { %734 = vmatpush.bf16.msrb.mxu0 %v1666_v13  ;;  %759 = vmatpush.bf16.msrb.mxu1 %v1668_v14  ;;  %s1783_s0 = sshra.s32 %s1443_s2, 4  ;;  %s1784_s0 = int_to_ptr.hbm [resolvable:$true] %s1783_s0 }
  0x2d   : > { %s1785_s17 = scalar_lea.hbm %s1784_s0, 8  ;;  %p1790_p0 = scmp.lt.s32.totalorder %s1784_s0, %s2274_s22 }
  0x2e   : > { %784 = vmatpush.bf16.msrb.mxu2 %v1670_v16  ;;  %809 = vmatpush.bf16.msrb.mxu3 %v1672_v17  ;;  %v1738_v16 = vld [vmem:[%s2233_s6 + $0x2] ss:$0 sm:$0xff]  ;;  %p1786_p11 = scmp.ne.s32.totalorder %s1784_s0, %s1785_s17  ;;  %p1791_p1 = scmp.lt.s32.totalorder %s1789_s15, %s1785_s17 }
  0x30   : > { %865 = vmatpush.bf16.msra.mxu0 %v1675_v19  ;;  %890 = vmatpush.bf16.msra.mxu1 %v1677_v20  ;;  %p1787_p12 = pnand %p1786_p11, %p1962_p5  ;;  %p1792_p2 = por %p1791_p1, %p1790_p0 }
  0x32   : > { %915 = vmatpush.bf16.msra.mxu2 %v1679_v18  ;;  %940 = vmatpush.bf16.msra.mxu3 %v1681_v24  ;;  %p1788_p13 = pneg %p1787_p12 }
  0x34   : > { %866 = vmatpush.bf16.msra.mxu0 %v1674_v22  ;;  %891 = vmatpush.bf16.msra.mxu1 %v1676_v23  ;;  %p1793_p3 = pnand %p1792_p2, %p1788_p13 }
  0x36   : > { %916 = vmatpush.bf16.msra.mxu2 %v1678_v21  ;;  %941 = vmatpush.bf16.msra.mxu3 %v1680_v25 }
  0x37   : > { %1552 = vmatmul.msk.bf16.vlgmr.msrb.gmra.mxu0 %vm591_vm0, %v546_v15  ;;  %1561 = vmatmul.msk.bf16.vlgmr.msrb.gmra.mxu1 %vm591_vm0, %v546_v15 }
  0x39   : > { %1570 = vmatmul.msk.bf16.vlgmr.msrb.gmra.mxu2 %vm591_vm0, %v546_v15  ;;  %1579 = vmatmul.msk.bf16.vlgmr.msrb.gmra.mxu3 %vm591_vm0, %v546_v15 }
  0x47   : > { %1588 = vmatmul.msk.bf16.vlgmr.msra.gmra.mxu0 %vm591_vm0, %v546_v15  ;;  %1597 = vmatmul.msk.bf16.vlgmr.msra.gmra.mxu1 %vm591_vm0, %v546_v15 }
  0x49   : > { %1606 = vmatmul.msk.bf16.vlgmr.msra.gmra.mxu2 %vm591_vm0, %v546_v15  ;;  %1615 = vmatmul.msk.bf16.vlgmr.msra.gmra.mxu3 %vm591_vm0, %v546_v15 }
  0xa4   : > { %v604_v26 = vpop.f32.mrf.mxu0  ;;  %v629_v27 = vpop.f32.mrf.mxu1 }
  0xa5   : > { %v630_v40 = vadd.f32 %v1729_v32, %v629_v27  ;;  %v605_v45 = vadd.f32 %v1728_v37, %v604_v26 }
  0xa7   : > { %v948_v48 = vmul.f32 0.35355338, %v630_v40  ;;  %v947_v55 = vmul.f32 0.35355338, %v605_v45 }
  0xa9   : > { %v952_v60 = vpack.c.bf16 %v948_v48, %v948_v48  ;;  %v951_v1 = vpack.c.bf16 %v947_v55, %v947_v55 }
  0xac   : > { %v654_v28 = vpop.f32.mrf.mxu2  ;;  %v679_v29 = vpop.f32.mrf.mxu3 }
  0xad   : > { %v606_v30 = vpop.f32.mrf.mxu0  ;;  %v631_v31 = vpop.f32.mrf.mxu1  ;;  %v655_v61 = vadd.f32 %v1730_v51, %v654_v28  ;;  %v680_v62 = vadd.f32 %v1731_v52, %v679_v29  ;;  %v1739_v28 = vld [vmem:[%s2233_s6 + $0x3] ss:$0 sm:$0xff] }
  0xaf   : > { %v949_v4 = vmul.f32 0.35355338, %v655_v61  ;;  %v950_v5 = vmul.f32 0.35355338, %v680_v62 }
  0xb1   : > { %v953_v8 = vpack.c.bf16 %v949_v4, %v949_v4  ;;  %v954_v9 = vpack.c.bf16 %v950_v5, %v950_v5 }
  0xb4   : > { %v656_v35 = vpop.f32.mrf.mxu2  ;;  %v681_v36 = vpop.f32.mrf.mxu3 }
  0xb5   : > { %v736_v38 = vpop.f32.mrf.mxu0  ;;  %v761_v39 = vpop.f32.mrf.mxu1 }
  0xb6   : > { %v737_v41 = vadd.f32 %v1732_v33, %v736_v38  ;;  %v762_v42 = vadd.f32 %v1733_v34, %v761_v39 }
  0xb8   : > { %v955_v43 = vpack.c.bf16 %v737_v41, %v737_v41  ;;  %v956_v44 = vpack.c.bf16 %v762_v42, %v762_v42 }
  0xba   : > { %v968_v49 = vsel %vm963_vm1, %v955_v43, 0  ;;  %v987_v50 = vsel %vm963_vm1, %v956_v44, 0 }
  0xbb   : > { %977 = vmatpush.bf16.xpose.msrb.mxu0 %v968_v49  ;;  %996 = vmatpush.bf16.xpose.msrb.mxu1 %v987_v50 }
  0xbc   : > { %v786_v53 = vpop.f32.mrf.mxu2  ;;  %v811_v54 = vpop.f32.mrf.mxu3 }
  0xbd   : > { %v787_v56 = vadd.f32 %v1734_v46, %v786_v53  ;;  %v812_v57 = vadd.f32 %v1735_v47, %v811_v54  ;;  %v738_v58 = vpop.f32.mrf.mxu0  ;;  %v763_v59 = vpop.f32.mrf.mxu1 }
  0xbf   : > { %v957_v63 = vpack.c.bf16 %v787_v56, %v787_v56  ;;  %v958_v0 = vpack.c.bf16 %v812_v57, %v812_v57 }
  0xc1   : > { %v1006_v2 = vsel %vm963_vm1, %v957_v63, 0  ;;  %v1025_v3 = vsel %vm963_vm1, %v958_v0, 0 }
  0xc2   : > { %1015 = vmatpush.bf16.xpose.msrb.mxu2 %v1006_v2  ;;  %1034 = vmatpush.bf16.xpose.msrb.mxu3 %v1025_v3 }
  0xc3   : > { %1616 = vmatmul.msk.bf16.vlgmr.msrb.gmra.mxu0 %vm963_vm1, %v951_v1  ;;  %1617 = vmatmul.msk.bf16.vlgmr.msrb.gmra.mxu1 %vm963_vm1, %v952_v60 }
  0xc4   : > { %v788_v6 = vpop.f32.mrf.mxu2  ;;  %v813_v7 = vpop.f32.mrf.mxu3 }
  0xc5   : > { %v868_v13 = vpop.f32.mrf.mxu0  ;;  %v893_v15 = vpop.f32.mrf.mxu1 }
  0xc6   : > { %v869_v14 = vadd.f32 %v1736_v10, %v868_v13  ;;  %v894_v17 = vadd.f32 %v1737_v11, %v893_v15 }
  0xc8   : > { %v959_v18 = vpack.c.bf16 %v869_v14, %v869_v14  ;;  %v960_v19 = vpack.c.bf16 %v894_v17, %v894_v17 }
  0xc9   : > { %1618 = vmatmul.msk.bf16.vlgmr.msrb.gmra.mxu2 %vm963_vm1, %v953_v8  ;;  %1619 = vmatmul.msk.bf16.vlgmr.msrb.gmra.mxu3 %vm963_vm1, %v954_v9 }
  0xca   : > { %v1093_v21 = vsel %vm1091_vm2, %v959_v18, 0  ;;  %v1112_v23 = vsel %vm1091_vm2, %v960_v19, 0 }
  0xcb   : > { %1102 = vmatpush.bf16.msra.mxu0 %v1093_v21  ;;  %1121 = vmatpush.bf16.msra.mxu1 %v1112_v23 }
  0xcc   : > { %v918_v20 = vpop.f32.mrf.mxu2  ;;  %v943_v29 = vpop.f32.mrf.mxu3 }
  0xcd   : > { %v919_v22 = vadd.f32 %v1738_v16, %v918_v20  ;;  %v870_v25 = vpop.f32.mrf.mxu0  ;;  %v895_v26 = vpop.f32.mrf.mxu1  ;;  %v944_v31 = vadd.f32 %v1739_v28, %v943_v29  ;;  %v1169_v20 = vld [vmem:[%s2234_s7] sm:$0xf] }
  0xce   : > { %v1177_v21 = vsel %vm1091_vm2, %v1169_v20, 0  ;;  %v1172_v26 = vld [vmem:[%s2234_s7 + $0xc] sm:$0xf]  ;;  %v1741_v20 = vld [vmem:[%s2240_s13] ss:$0 sm:$0xff] }
  0xcf   : > { %v961_v24 = vpack.c.bf16 %v919_v22, %v919_v22  ;;  %v962_v32 = vpack.c.bf16 %v944_v31, %v944_v31  ;;  %1186 = vmatpush.bf16.msrb.mxu0 %v1177_v21  ;;  %v1170_v22 = vld [vmem:[%s2234_s7 + $0x4] sm:$0xf] }
  0xd0   : > { %v1196_v23 = vsel %vm1091_vm2, %v1170_v22, 0  ;;  %v1742_v22 = vld [vmem:[%s2241_s14] ss:$0 sm:$0xff] }
  0xd1   : > { %v1131_v27 = vsel %vm1091_vm2, %v961_v24, 0  ;;  %v1150_v33 = vsel %vm1091_vm2, %v962_v32, 0  ;;  %1205 = vmatpush.bf16.msrb.mxu1 %v1196_v23  ;;  %v1171_v24 = vld [vmem:[%s2234_s7 + $0x8] sm:$0xf] }
  0xd2   : > { %1140 = vmatpush.bf16.msra.mxu2 %v1131_v27  ;;  %1159 = vmatpush.bf16.msra.mxu3 %v1150_v33  ;;  %v1215_v25 = vsel %vm1091_vm2, %v1171_v24, 0  ;;  %v1234_v27 = vsel %vm1091_vm2, %v1172_v26, 0 }
  0xd4   : > { %v920_v30 = vpop.f32.mrf.mxu2  ;;  %v945_v34 = vpop.f32.mrf.mxu3 }
  0xd6   : > { %1224 = vmatpush.bf16.msrb.mxu2 %v1215_v25  ;;  %1243 = vmatpush.bf16.msrb.mxu3 %v1234_v27  ;;  %v1685_v27 = vld [vmem:[%s2238_s11 + $0x8] sm:$0xff] }
 0x140   : > { %v979_v35 = vpop.f32.mrf.mxu0  ;;  %v998_v36 = vpop.f32.mrf.mxu1 }
 0x141   : > { %v1040_v37 = vsel %vm963_vm1, %v979_v35, -inf  ;;  %v1043_v40 = vsel %vm963_vm1, %v998_v36, -inf }
 0x142   : > { %1041 = vmax.xlane.f32.xlu1 %v1040_v37 }
 0x148   : > { %v981_v38 = vpop.f32.mrf.mxu0  ;;  %v1000_v39 = vpop.f32.mrf.mxu1 }
 0x14a   : > { %1044 = vmax.xlane.f32.xlu1 %v1043_v40 }
 0x14c   : > { %v1017_v41 = vpop.f32.mrf.mxu2  ;;  %v1036_v42 = vpop.f32.mrf.mxu3 }
 0x14d   : > { %v1046_v43 = vsel %vm963_vm1, %v1017_v41, -inf  ;;  %v1049_v46 = vsel %vm963_vm1, %v1036_v42, -inf }
 0x14e   : > { %1047 = vmax.xlane.f32.xlu0 %v1046_v43 }
 0x154   : > { %v1019_v44 = vpop.f32.mrf.mxu2  ;;  %v1038_v45 = vpop.f32.mrf.mxu3 }
 0x156   : > { %1050 = vmax.xlane.f32.xlu0 %v1049_v46 }
 0x1b5   : > { %v1042_v47 = vpop.xlane.xlu1 %1041 }
 0x1b6   : > { %v1052_v48 = vsub.f32 %v979_v35, %v1042_v47 }
 0x1b8   : > { %v1056_v49 = vmul.f32 1.442695, %v1052_v48 }
 0x1ba   : > { %1747 = vpow2.f32 %v1056_v49 }
 0x1bd   : > { %v1045_v50 = vpop.xlane.xlu1 %1044 }
 0x1be   : > { %v1053_v51 = vsub.f32 %v998_v36, %v1045_v50 }
 0x1c0   : > { %v1748_v52 = vpop.eup %1747  ;;  %v1058_v53 = vmul.f32 1.442695, %v1053_v51 }
 0x1c1   : > { %v1048_v54 = vpop.xlane.xlu0 %1047  ;;  %v1064_v55 = vsel %vm963_vm1, %v1748_v52, 0.0 }
 0x1c2   : > { %1749 = vpow2.f32 %v1058_v53  ;;  %v1054_v56 = vsub.f32 %v1017_v41, %v1048_v54  ;;  %1065 = vadd.xlane.f32.xlu0 %v1064_v55 }
 0x1c4   : > { %v1060_v57 = vmul.f32 1.442695, %v1054_v56 }
 0x1c6   : > { %1751 = vpow2.f32 %v1060_v57 }
 0x1c8   : > { %v1750_v58 = vpop.eup %1749 }
 0x1c9   : > { %v1051_v59 = vpop.xlane.xlu0 %1050  ;;  %v1067_v60 = vsel %vm963_vm1, %v1750_v58, 0.0 }
 0x1ca   : > { %v1055_v61 = vsub.f32 %v1036_v42, %v1051_v59  ;;  %1068 = vadd.xlane.f32.xlu1 %v1067_v60  ;;  %v1833_v59 = vmov 32.0  }
 0x1cc   : > { %v1752_v62 = vpop.eup %1751  ;;  %v1062_v63 = vmul.f32 1.442695, %v1055_v61 }
 0x1cd   : > { %v1070_v0 = vsel %vm963_vm1, %v1752_v62, 0.0 }
 0x1ce   : > { %1753 = vpow2.f32 %v1062_v63  ;;  %1071 = vadd.xlane.f32.xlu2 %v1070_v0 }
 0x1d4   : > { %v1754_v1 = vpop.eup %1753 }
 0x1d5   : > { %v1073_v2 = vsel %vm963_vm1, %v1754_v1, 0.0 }
 0x1d6   : > { %1074 = vadd.xlane.f32.xlu2 %v1073_v2 }
 0x235   : > { %v1066_v3 = vpop.xlane.xlu0 %1065 }
 0x236   : > { %1755 = vrcp.f32 %v1066_v3 }
 0x23c   : > { %v1756_v4 = vpop.eup %1755 }
 0x23d   : > { %v1080_v5 = vmul.f32 %v1756_v4, %v1748_v52  ;;  %v1069_v6 = vpop.xlane.xlu1 %1068  ;;  %v1740_v52 = vld [vmem:[%s2235_s8] ss:$0 sm:$0xff] }
 0x23e   : > { %1757 = vrcp.f32 %v1069_v6 }
 0x23f   : > { %v1084_v7 = vpack.c.bf16 %v1080_v5, %v1080_v5 }
 0x241   : > { %v1072_v8 = vpop.xlane.xlu2 %1071  ;;  %1620 = vmatmul.msk.bf16.vlgmr.msra.gmra.mxu0 %vm963_vm1, %v1084_v7  ;;  %v1682_v7 = vld [vmem:[%s2236_s9] sm:$0xff] }
 0x242   : > { %1759 = vrcp.f32 %v1072_v8  ;;  %v1687_v8 = vld [vmem:[%s2238_s11 + $0x18] sm:$0xff] }
 0x244   : > { %v1758_v9 = vpop.eup %1757 }
 0x245   : > { %v1081_v10 = vmul.f32 %v1758_v9, %v1750_v58 }
 0x247   : > { %v1085_v11 = vpack.c.bf16 %v1081_v10, %v1081_v10 }
 0x248   : > { %v1760_v13 = vpop.eup %1759 }
 0x249   : > { %v1082_v14 = vmul.f32 %v1760_v13, %v1752_v62  ;;  %v1075_v15 = vpop.xlane.xlu2 %1074  ;;  %1621 = vmatmul.msk.bf16.vlgmr.msra.gmra.mxu1 %vm963_vm1, %v1085_v11  ;;  %v1686_v11 = vld [vmem:[%s2238_s11 + $0x10] sm:$0xff] }
 0x24a   : > { %1761 = vrcp.f32 %v1075_v15  ;;  %1384 = vmatpush.bf16.msra.mxu1 %v1687_v8 }
 0x24b   : > { %v1086_v16 = vpack.c.bf16 %v1082_v14, %v1082_v14  ;;  %1763 = vrcp.f32 %v1833_v59 }
 0x24d   : > { %1622 = vmatmul.msk.bf16.vlgmr.msra.gmra.mxu2 %vm963_vm1, %v1086_v16 }
 0x24e   : > { %1385 = vmatpush.bf16.msra.mxu1 %v1686_v11 }
 0x250   : > { %v1762_v17 = vpop.eup %1761 }
 0x251   : > { %v1083_v18 = vmul.f32 %v1762_v17, %v1754_v1  ;;  %v1764_v60 = vpop.eup %1763 }
 0x252   : > { %v1268_v61 = vmul.f32 32.0, %v1764_v60  ;;  %vm1272_vm3 = vweird.f32 %v1764_v60  ;;  %1386 = vmatpush.bf16.msra.mxu1 %v1685_v27 }
 0x253   : > { %v1087_v19 = vpack.c.bf16 %v1083_v18, %v1083_v18 }
 0x254   : > { %v1269_v62 = vsub.f32 1.0, %v1268_v61 }
 0x255   : > { %1623 = vmatmul.msk.bf16.vlgmr.msra.gmra.mxu3 %vm963_vm1, %v1087_v19 }
 0x256   : > { %v1270_v63 = vmul.f32 %v1764_v60, %v1269_v62 }
 0x258   : > { %v1271_v0 = vadd.f32 %v1764_v60, %v1270_v63 }
 0x25a   : > { %v1273_v1 = vsel %vm1272_vm3, %v1764_v60, %v1271_v0 }
 0x2be   : > { %v1104_v28 = vpop.f32.mrf.mxu0 }
 0x2bf   : > { %v1165_v29 = vpack.c.bf16 %v1104_v28, %v1104_v28  ;;  %v1684_v28 = vld [vmem:[%s2238_s11] sm:$0xff] }
 0x2c0   : > { %1387 = vmatpush.bf16.msra.mxu1 %v1684_v28 }
 0x2c1   : > { %1624 = vmatmul.msk.bf16.vlgmr.msrb.gmra.mxu0 %vm963_vm1, %v1165_v29  ;;  %v1743_v29 = vld [vmem:[%s2237_s10] ss:$0 sm:$0xff] }
 0x2c6   : > { %v1106_v30 = vpop.f32.mrf.mxu0  ;;  %v1123_v31 = vpop.f32.mrf.mxu1 }
 0x2c7   : > { %v1166_v32 = vpack.c.bf16 %v1123_v31, %v1123_v31 }
 0x2c9   : > { %1625 = vmatmul.msk.bf16.vlgmr.msrb.gmra.mxu1 %vm963_vm1, %v1166_v32 }
 0x2ce   : > { %v1125_v33 = vpop.f32.mrf.mxu1 }
 0x2d0   : > { %v1142_v34 = vpop.f32.mrf.mxu2 }
 0x2d1   : > { %v1167_v35 = vpack.c.bf16 %v1142_v34, %v1142_v34 }
 0x2d3   : > { %1626 = vmatmul.msk.bf16.vlgmr.msrb.gmra.mxu2 %vm963_vm1, %v1167_v35  ;;  %v1744_v35 = vld [vmem:[%s2239_s12] ss:$0 sm:$0xff] }
 0x2d8   : > { %v1144_v36 = vpop.f32.mrf.mxu2  ;;  %v1161_v37 = vpop.f32.mrf.mxu3 }
 0x2d9   : > { %v1168_v38 = vpack.c.bf16 %v1161_v37, %v1161_v37 }
 0x2db   : > { %1627 = vmatmul.msk.bf16.vlgmr.msrb.gmra.mxu3 %vm963_vm1, %v1168_v38 }
 0x2e0   : > { %v1163_v39 = vpop.f32.mrf.mxu3 }
 0x33e   : > { %v1188_v40 = vpop.f32.mrf.mxu0 }
 0x33f   : > { %v1249_v46 = vsel %vm591_vm0, %v1188_v40, 0.0 }
 0x346   : > { %v1190_v41 = vpop.f32.mrf.mxu0  ;;  %v1207_v42 = vpop.f32.mrf.mxu1 }
 0x347   : > { %v1250_v45 = vsel %vm591_vm0, %v1207_v42, 0.0 }
 0x348   : > { %v1251_v48 = vadd.f32 %v1250_v45, %v1249_v46 }
 0x34e   : > { %v1209_v43 = vpop.f32.mrf.mxu1 }
 0x356   : > { %v1226_v44 = vpop.f32.mrf.mxu2 }
 0x357   : > { %v1252_v47 = vsel %vm591_vm0, %v1226_v44, 0.0 }
 0x358   : > { %v1253_v49 = vadd.f32 %v1252_v47, %v1251_v48 }
 0x35e   : > { %v1228_v50 = vpop.f32.mrf.mxu2  ;;  %v1245_v51 = vpop.f32.mrf.mxu3 }
 0x35f   : > { %v1254_v53 = vsel %vm591_vm0, %v1245_v51, 0.0 }
 0x360   : > { %v1255_v54 = vadd.f32 %v1254_v53, %v1253_v49 }
 0x362   : > { %v1260_v55 = vadd.f32 %v1740_v52, %v1255_v54 }
 0x364   : > { %v1261_v56 = vadd.f32 %v1260_v55, %v2013_v12  ;;  %v1683_v12 = vld [vmem:[%s2236_s9 + $0x8] sm:$0xff]  ;;  %v1745_v55 = vld [vmem:[%s2273_s20] ss:$0 sm:$0xff] }
 0x365   : > { %1331 = vmatpush.bf16.msra.mxu0 %v1683_v12 }
 0x366   : > { %v1247_v57 = vpop.f32.mrf.mxu3  ;;  %v1264_v58 = vsel %vm591_vm0, %v1261_v56, 0.0 }
 0x367   : > { %1265 = vadd.xlane.f32.xlu2 %v1264_v58  ;;  %v1746_v58 = vld [vmem:[%s2276_s27] ss:$0 sm:$0xff] }
 0x369   : > { %1332 = vmatpush.bf16.msra.mxu0 %v1682_v7 }
 0x3da   : > { %v1266_v2 = vpop.xlane.xlu2 %1265 }
 0x3db   : > { %v1274_v3 = vmul.f32 %v1273_v1, %v1266_v2 }
 0x3dd   : > { %v1275_v4 = vsub.f32 %v1261_v56, %v1274_v3 }
 0x3df   : > { %v1276_v5 = vmul.f32 %v1275_v4, %v1275_v4 }
 0x3e1   : > { %v1277_v6 = vsel %vm591_vm0, %v1276_v5, 0.0 }
 0x3e2   : > { %1278 = vadd.xlane.f32.xlu0 %v1277_v6 }
 0x455   : > { %v1279_v9 = vpop.xlane.xlu0 %1278 }
 0x456   : > { %v1280_v10 = vmul.f32 %v1279_v9, %v1273_v1 }
 0x458   : > { %v1281_v13 = vadd.f32 1e-05, %v1280_v10 }
 0x45a   : > { %1765 = vrsqrt.f32 %v1281_v13  ;;  %vm1288_vm5 = vweird.f32 %v1281_v13 }
 0x460   : > { %v1766_v14 = vpop.eup %1765 }
 0x461   : > { %v1283_v15 = vmul.f32 %v1766_v14, %v1281_v13  ;;  %vm1289_vm4 = vweird.f32 %v1766_v14 }
 0x462   : > { %vm1290_vm6 = vmor %vm1288_vm5, %vm1289_vm4 }
 0x463   : > { %v1284_v16 = vmul.f32 %v1766_v14, %v1283_v15 }
 0x465   : > { %v1285_v17 = vmul.f32 0.5, %v1284_v16 }
 0x467   : > { %v1286_v18 = vsub.f32 1.5, %v1285_v17 }
 0x469   : > { %v1287_v19 = vmul.f32 %v1766_v14, %v1286_v18 }
 0x46b   : > { %v1291_v21 = vsel %vm1290_vm6, %v1766_v14, %v1287_v19 }
 0x46c   : > { %v1292_v23 = vmul.f32 %v1291_v21, %v1275_v4 }
 0x46e   : > { %v1296_v24 = vmul.f32 %v1741_v20, %v1292_v23 }
 0x470   : > { %v1300_v25 = vadd.f32 %v1742_v22, %v1296_v24 }
 0x472   : > { %v1301_v26 = vpack.c.bf16 %v1300_v25, %v1300_v25 }
 0x474   : > { %1636 = vmatmul.msk.bf16.vlgmr.msra.gmra.mxu0 %vm591_vm0, %v1301_v26 }
 0x4f1   : > { %v1334_v30 = vpop.f32.mrf.mxu0 }
 0x4f2   : > { %v1335_v31 = vadd.f32 %v1743_v29, %v1334_v30 }
 0x4f4   : > { %v1338_v32 = vmax.f32 %v1335_v31, 0.0 }
 0x4f6   : > { %v1339_v33 = vpack.c.bf16 %v1338_v32, %v1338_v32 }
 0x4f8   : > { %1653 = vmatmul.msk.bf16.vlgmr.msra.gmra.mxu1 %vm1376_vm7, %v1339_v33 }
 0x4f9   : > { %v1336_v34 = vpop.f32.mrf.mxu0 }
 0x575   : > { %v1389_v36 = vpop.f32.mrf.mxu1 }
 0x576   : > { %v1390_v37 = vadd.f32 %v1744_v35, %v1389_v36 }
 0x578   : > { %v1393_v38 = vadd.f32 %v1390_v37, %v1300_v25 }
 0x57a   : > { %v1396_v39 = vsel %vm591_vm0, %v1393_v38, 0.0 }
 0x57b   : > { %1397 = vadd.xlane.f32.xlu1 %v1396_v39 }
 0x57d   : > { %v1391_v40 = vpop.f32.mrf.mxu1 }
 0x5ee   : > { %v1398_v41 = vpop.xlane.xlu1 %1397 }
 0x5ef   : > { %v1399_v42 = vmul.f32 %v1398_v41, %v1273_v1 }
 0x5f1   : > { %v1400_v43 = vsub.f32 %v1393_v38, %v1399_v42 }
 0x5f3   : > { %v1401_v44 = vmul.f32 %v1400_v43, %v1400_v43 }
 0x5f5   : > { %v1402_v45 = vsel %vm591_vm0, %v1401_v44, 0.0 }
 0x5f6   : > { %1403 = vadd.xlane.f32.xlu2 %v1402_v45 }
 0x669   : > { %v1404_v46 = vpop.xlane.xlu2 %1403 }
 0x66a   : > { %v1405_v47 = vmul.f32 %v1404_v46, %v1273_v1 }
 0x66c   : > { %v1406_v48 = vadd.f32 1e-05, %v1405_v47 }
 0x66e   : > { %1767 = vrsqrt.f32 %v1406_v48  ;;  %vm1413_vm9 = vweird.f32 %v1406_v48 }
 0x674   : > { %v1768_v49 = vpop.eup %1767 }
 0x675   : > { %v1408_v50 = vmul.f32 %v1768_v49, %v1406_v48  ;;  %vm1414_vm8 = vweird.f32 %v1768_v49 }
 0x676   : > { %vm1415_vm10 = vmor %vm1413_vm9, %vm1414_vm8 }
 0x677   : > { %v1409_v51 = vmul.f32 %v1768_v49, %v1408_v50 }
 0x679   : > { %v1410_v52 = vmul.f32 0.5, %v1409_v51 }
 0x67b   : > { %v1411_v53 = vsub.f32 1.5, %v1410_v52 }
 0x67d   : > { %v1412_v54 = vmul.f32 %v1768_v49, %v1411_v53 }
 0x67f   : > { %v1416_v56 = vsel %vm1415_vm10, %v1768_v49, %v1412_v54 }
 0x680   : > { %v1417_v57 = vmul.f32 %v1416_v56, %v1400_v43 }
 0x682   : > { %v1421_v59 = vmul.f32 %v1745_v55, %v1417_v57 }
 0x684   : > { %v1425_v60 = vadd.f32 %v1746_v58, %v1421_v59 }
 0x686   : > { %1426 = vst.msk [vmem:[%s539_s29] sm:$0xff] %vm591_vm0, %v1425_v60 }
 0x687   : > { %1796 = shalt.err (!%p1793_p3)
}
 0x688   : > { %1688 = dma.vmem_to_hbm [thread:$0]  (%p1962_p5), %s1441_s28, 128, %s1443_s2, %s1428_s1  }
 0x689 PF: > { %s2277_s26 = sld [smem:[#allocation7_spill]] }
 0x68a   : > { %s2278_s18 = sld [smem:[#allocation5_spill]] }
 0x68f   : > { %p1694_p4 = scmp.ge.s32.totalorder %s2277_s26, 2 }
 0x690   : > { %s1454_s27 = sand.u32 1, %s2278_s18  }
 0x691   : > { %p1691_p7 = pnand %p1694_p4, %p1966_p6  ;;  %s1455_s29 = scalar_lea.sflag [#allocation3], %s1454_s27 }
 0x693   : > { %p1692_p8 = pneg %p1691_p7 }
 0x695   : > { %1814 = dma.done.wait (%p1692_p8), %s1455_s29, 128  }
 0x696   : > { %1816 = vsyncadd (%p1692_p8), %s1455_s29, 4294967168  ;;  %s2280_s27 = sld [smem:[#allocation8_spill]]  ;;  %s2283_s24 = smov %s1823_s25 }
 0x697   : > { %s2281_s0 = sld [smem:[#allocation6_spill]] }
 0x698   : > { %s2282_s26 = sld [smem:[#allocation9_spill]] }
 0x69c   : > { %p27_p9 = scmp.ge.s32.totalorder %s2280_s27, 4  }
 0x69d   : > { %s2284_s25 = smov %s2281_s0 }
 0x69e   :  { %29 = sbr.rel (!%p27_p9) target bundleno = 10 (0xa), region = 123 }
 0x6a3   :  { %1461 = vsyncpa [#allocation3], 1 }
 0x6a4   :  { %1463 = vsyncpa [#allocation3 + $0x1], 1 }

</bundles_post_ra>
